<compile_context>
chip_gen: v7x
topology: tpu7x:2x2x1
jax: 0.10.0
libtpu: 0.0.40
codegen_flags: <defaults>
</compile_context>

<pallas_src>
import functools

import jax
import jax.numpy as jnp
from jax.experimental import pallas as pl
from jax.experimental.pallas import tpu as pltpu

INPUT_DIM = 10
HIDDEN_DIM = 59
OUTPUT_DIM = 1
H_PAD = 128            # lane-aligned hidden width
T_CHUNK = 8            # timesteps per grid step (multiple of 8 -> sublane tile)


def rnn_fc_kernel(x_ref, w_ih_t_ref, w_hh_t_ref, bias_ref, w_fc_row_ref,
                  b_fc_ref, out_ref, h_ref, *, t_chunk, t_total):
    """One (batch block, time chunk) grid step of the RNN + final FC.

    x_ref       : (B_BLK, T_CHUNK, D)   batch-first input chunk
    w_ih_t_ref  : (D, H_PAD)            W_ih^T, zero-padded cols
    w_hh_t_ref  : (H_PAD, H_PAD)        W_hh^T, zero-padded rows/cols
    bias_ref    : (1, H_PAD)            b_ih + b_hh, zero-padded
    w_fc_row_ref: (1, H_PAD)            fc weight row, zero-padded
    b_fc_ref    : (1, 1)
    out_ref     : (B_BLK, H_PAD)        lane-dense output (col 0 is the answer)
    h_ref       : (B_BLK, H_PAD)        VMEM scratch, persists across time axis
    """
    t_blk = pl.program_id(1)

    @pl.when(t_blk == 0)
    def _init():
        h_ref[...] = jnp.zeros_like(h_ref)

    b_block = x_ref.shape[0]
    d = x_ref.shape[2]
    h_pad = w_hh_t_ref.shape[0]

    # ---- hoisted input projection (+ fused biases): one MXU matmul / chunk ----
    x_flat = x_ref[...].reshape(b_block * t_chunk, d)
    xp = jnp.dot(x_flat, w_ih_t_ref[...], preferred_element_type=jnp.float32)
    xp = xp + bias_ref[...]                                  # (B*Tc, H) + (1, H)
    xp = xp.reshape(b_block, t_chunk, h_pad)

    # ---- serial recurrence: per step only h @ W_hh^T + add + relu ----
    w_hh_t = w_hh_t_ref[...]
    h = h_ref[...]
    padded_tail = (t_total % t_chunk) != 0                   # trace-time constant
    for t in range(t_chunk):                                 # small fixed unroll
        pre = xp[:, t, :] + jnp.dot(h, w_hh_t, preferred_element_type=jnp.float32)
        new_h = jnp.maximum(pre, 0.0)
        if padded_tail:
            valid = (t_blk * t_chunk + t) < t_total
            h = jnp.where(valid, new_h, h)
        else:
            h = new_h
    h_ref[...] = h

    # ---- final FC on the last hidden state: VPU mul + lane reduction, ----
    # ---- stored as a lane-dense (B_BLK, H_PAD) tile.                   ----
    @pl.when(t_blk == pl.num_programs(1) - 1)
    def _finalize():
        fc = jnp.sum(h * w_fc_row_ref[...], axis=-1, keepdims=True) + b_fc_ref[...]
        out_ref[...] = jnp.broadcast_to(fc, out_ref.shape)


def _round_up(x, m):
    return ((x + m - 1) // m) * m


def rnn_model_forward(x, params, *, t_chunk=T_CHUNK, max_batch_block=128):
    """x: (B, T, INPUT_DIM) batch-first, like the PyTorch module."""
    B, T, D = x.shape
    assert D == INPUT_DIM
    x = x.astype(jnp.float32)

    b_block = min(_round_up(B, 8), max_batch_block)
    b_pad = _round_up(B, b_block)
    t_pad = _round_up(T, t_chunk)

    x_p = jnp.pad(x, ((0, b_pad - B), (0, t_pad - T), (0, 0)))

    H = HIDDEN_DIM
    w_ih_t = jnp.zeros((D, H_PAD), jnp.float32).at[:, :H].set(params["w_ih"].T)
    w_hh_t = jnp.zeros((H_PAD, H_PAD), jnp.float32).at[:H, :H].set(params["w_hh"].T)
    bias = jnp.zeros((1, H_PAD), jnp.float32).at[0, :H].set(
        params["b_ih"] + params["b_hh"])
    w_fc_row = jnp.zeros((1, H_PAD), jnp.float32).at[0, :H].set(params["w_fc"][0])
    b_fc = params["b_fc"].reshape(1, 1).astype(jnp.float32)

    grid = (b_pad // b_block, t_pad // t_chunk)
    kernel = functools.partial(rnn_fc_kernel, t_chunk=t_chunk, t_total=T)

    out = pl.pallas_call(
        kernel,
        out_shape=jax.ShapeDtypeStruct((b_pad, H_PAD), jnp.float32),
        grid_spec=pltpu.PrefetchScalarGridSpec(
            num_scalar_prefetch=0,
            grid=grid,
            in_specs=[
                pl.BlockSpec((b_block, t_chunk, D), lambda b, t: (b, t, 0)),
                pl.BlockSpec((D, H_PAD), lambda b, t: (0, 0)),
                pl.BlockSpec((H_PAD, H_PAD), lambda b, t: (0, 0)),
                pl.BlockSpec((1, H_PAD), lambda b, t: (0, 0)),
                pl.BlockSpec((1, H_PAD), lambda b, t: (0, 0)),
                pl.BlockSpec((1, 1), lambda b, t: (0, 0)),
            ],
            out_specs=pl.BlockSpec((b_block, H_PAD), lambda b, t: (b, 0)),
            scratch_shapes=[pltpu.VMEM((b_block, H_PAD), jnp.float32)],
        ),
        compiler_params=pltpu.CompilerParams(
            dimension_semantics=("parallel", "arbitrary"),
            vmem_limit_bytes=32 * 1024 * 1024,
        ),
    )(x_p, w_ih_t, w_hh_t, bias, w_fc_row, b_fc)

    # logical batch rows, column 0; PyTorch: outputs.squeeze()
    return jnp.squeeze(out[:B, 0])


def init_params(key):
    """Deterministic init mimicking PyTorch's U(-1/sqrt(H), 1/sqrt(H))."""
    ks = jax.random.split(key, 6)
    bound = 1.0 / jnp.sqrt(jnp.float32(HIDDEN_DIM))
    u = lambda k, shape: jax.random.uniform(
        k, shape, dtype=jnp.float32, minval=-bound, maxval=bound)
    return {
        "w_ih": u(ks[0], (HIDDEN_DIM, INPUT_DIM)),
        "w_hh": u(ks[1], (HIDDEN_DIM, HIDDEN_DIM)),
        "b_ih": u(ks[2], (HIDDEN_DIM,)),
        "b_hh": u(ks[3], (HIDDEN_DIM,)),
        "w_fc": u(ks[4], (OUTPUT_DIM, HIDDEN_DIM)),
        "b_fc": u(ks[5], (OUTPUT_DIM,)),
    }


def reference_forward(x, params):
    """Pure-JAX reference of the PyTorch forward (correctness check)."""
    B = x.shape[0]
    h = jnp.zeros((B, HIDDEN_DIM), jnp.float32)

    def step(h, x_t):
        pre = (x_t @ params["w_ih"].T + params["b_ih"]
               + h @ params["w_hh"].T + params["b_hh"])
        h = jnp.maximum(pre, 0.0)
        return h, h

    h_last, _ = jax.lax.scan(step, h, jnp.transpose(x, (1, 0, 2)))
    out = h_last @ params["w_fc"].T + params["b_fc"]
    return jnp.squeeze(out)


if __name__ == "__main__":
    key = jax.random.PRNGKey(0)
    k_params, k_x, k_x2 = jax.random.split(key, 3)
    params = init_params(k_params)

    # Main check: B=4, T=8 (aligned case, no tail padding).
    B, T = 4, 8
    x = jax.random.normal(k_x, (B, T, INPUT_DIM), dtype=jnp.float32)
    out = jax.block_until_ready(rnn_model_forward(x, params))
    ref = reference_forward(x, params)
    assert out.shape == (B,), out.shape
    assert jnp.allclose(out, ref, atol=1e-4, rtol=1e-4), (out, ref)

    # Ragged check: B=3, T=5 exercises batch padding and the padded-tail guard.
    B2, T2 = 3, 5
    x2 = jax.random.normal(k_x2, (B2, T2, INPUT_DIM), dtype=jnp.float32)
    out2 = jax.block_until_ready(rnn_model_forward(x2, params))
    ref2 = reference_forward(x2, params)
    assert out2.shape == (B2,), out2.shape
    assert jnp.allclose(out2, ref2, atol=1e-4, rtol=1e-4), (out2, ref2)

    print("KERNEL_OK")
</pallas_src>

<mosaic_0001>
module attributes {stable_mosaic.version = 11 : i64} {
  func.func @rnn_fc_kernel(%arg0: i32, %arg1: i32, %arg2: memref<8x8x10xf32, #tpu.memory_space<vmem>>, %arg3: memref<10x128xf32, #tpu.memory_space<vmem>>, %arg4: memref<128x128xf32, #tpu.memory_space<vmem>>, %arg5: memref<1x128xf32, #tpu.memory_space<vmem>>, %arg6: memref<1x128xf32, #tpu.memory_space<vmem>>, %arg7: memref<1x1xf32, #tpu.memory_space<vmem>>, %arg8: memref<8x128xf32, #tpu.memory_space<vmem>>, %arg9: memref<8x128xf32, #tpu.memory_space<vmem>>) attributes {dimension_semantics = [#tpu.dimension_semantics<parallel>, #tpu.dimension_semantics<arbitrary>], iteration_bounds = array<i64: 1, 1>, scalar_prefetch = 0 : i64, scratch_operands = 1 : i64, tpu.core_type = #tpu.core_type<tc>, window_params = [{transform_indices = @transform_0, window_bounds = array<i64: 8, 8, 10>}, {pipeline_mode = #tpu.pipeline_mode<synchronous>, transform_indices = @transform_1, window_bounds = array<i64: 10, 128>}, {pipeline_mode = #tpu.pipeline_mode<synchronous>, transform_indices = @transform_2, window_bounds = array<i64: 128, 128>}, {pipeline_mode = #tpu.pipeline_mode<synchronous>, transform_indices = @transform_3, window_bounds = array<i64: 1, 128>}, {pipeline_mode = #tpu.pipeline_mode<synchronous>, transform_indices = @transform_4, window_bounds = array<i64: 1, 128>}, {pipeline_mode = #tpu.pipeline_mode<synchronous>, transform_indices = @transform_5, window_bounds = array<i64: 1, 1>}, {transform_indices = @transform_6, window_bounds = array<i64: 8, 128>}]} {
    %c0_i32 = arith.constant 0 : i32
    %0 = arith.cmpi eq, %arg1, %c0_i32 : i32
    %1 = arith.extui %0 : i1 to i32
    %c0_i32_0 = arith.constant 0 : i32
    %2 = arith.cmpi ne, %1, %c0_i32_0 : i32
    scf.if %2 {
      %cst_31 = arith.constant 0.000000e+00 : f32
      %65 = vector.broadcast %cst_31 : f32 to vector<8x128xf32>
      %c0_32 = arith.constant 0 : index
      %c0_33 = arith.constant 0 : index
      %66 = vector.load %arg9[%c0_32, %c0_33] : memref<8x128xf32, #tpu.memory_space<vmem>>, vector<8x128xf32>
      tpu.vector_store %arg9[%c0_32, %c0_33], %65 {strides = array<i32>} : memref<8x128xf32, #tpu.memory_space<vmem>>, vector<8x128xf32>,
    } else {
    }
    %c0 = arith.constant 0 : index
    %c0_1 = arith.constant 0 : index
    %c0_2 = arith.constant 0 : index
    %3 = vector.load %arg2[%c0, %c0_1, %c0_2] : memref<8x8x10xf32, #tpu.memory_space<vmem>>, vector<8x8x10xf32>
    %4 = vector.shape_cast %3 : vector<8x8x10xf32> to vector<64x10xf32>
    %c0_3 = arith.constant 0 : index
    %c0_4 = arith.constant 0 : index
    %5 = vector.load %arg3[%c0_3, %c0_4] : memref<10x128xf32, #tpu.memory_space<vmem>>, vector<10x128xf32>
    %cst = arith.constant dense<0.000000e+00> : vector<64x128xf32>
    %6 = tpu.matmul %4, %5, %cst {dimension_numbers = #tpu.dot_dimension_numbers<[1], [0], [0], [1], [0, 0, 1, 1], [], []>} : vector<64x10xf32>, vector<10x128xf32>, vector<64x128xf32> -> vector<64x128xf32>
    %c0_5 = arith.constant 0 : index
    %c0_6 = arith.constant 0 : index
    %7 = vector.load %arg5[%c0_5, %c0_6] : memref<1x128xf32, #tpu.memory_space<vmem>>, vector<1x128xf32>
    %8 = vector.broadcast %7 : vector<1x128xf32> to vector<64x128xf32>
    %9 = arith.addf %6, %8 : vector<64x128xf32>
    %10 = vector.shape_cast %9 : vector<64x128xf32> to vector<8x8x128xf32>
    %c0_7 = arith.constant 0 : index
    %c0_8 = arith.constant 0 : index
    %11 = vector.load %arg4[%c0_7, %c0_8] : memref<128x128xf32, #tpu.memory_space<vmem>>, vector<128x128xf32>
    %c0_9 = arith.constant 0 : index
    %c0_10 = arith.constant 0 : index
    %12 = vector.load %arg9[%c0_9, %c0_10] : memref<8x128xf32, #tpu.memory_space<vmem>>, vector<8x128xf32>
    %13 = vector.extract_strided_slice %10 {offsets = [0, 0, 0], sizes = [8, 1, 128], strides = [1, 1, 1]} : vector<8x8x128xf32> to vector<8x1x128xf32>
    %14 = vector.shape_cast %13 : vector<8x1x128xf32> to vector<8x128xf32>
    %cst_11 = arith.constant dense<0.000000e+00> : vector<8x128xf32>
    %15 = tpu.matmul %12, %11, %cst_11 {dimension_numbers = #tpu.dot_dimension_numbers<[1], [0], [0], [1], [0, 0, 1, 1], [], []>} : vector<8x128xf32>, vector<128x128xf32>, vector<8x128xf32> -> vector<8x128xf32>
    %16 = arith.addf %14, %15 : vector<8x128xf32>
    %cst_12 = arith.constant 0.000000e+00 : f32
    %17 = vector.broadcast %cst_12 : f32 to vector<8x128xf32>
    %18 = arith.maximumf %16, %17 : vector<8x128xf32>
    %19 = vector.extract_strided_slice %10 {offsets = [0, 1, 0], sizes = [8, 1, 128], strides = [1, 1, 1]} : vector<8x8x128xf32> to vector<8x1x128xf32>
    %20 = vector.shape_cast %19 : vector<8x1x128xf32> to vector<8x128xf32>
    %cst_13 = arith.constant dense<0.000000e+00> : vector<8x128xf32>
    %21 = tpu.matmul %18, %11, %cst_13 {dimension_numbers = #tpu.dot_dimension_numbers<[1], [0], [0], [1], [0, 0, 1, 1], [], []>} : vector<8x128xf32>, vector<128x128xf32>, vector<8x128xf32> -> vector<8x128xf32>
    %22 = arith.addf %20, %21 : vector<8x128xf32>
    %cst_14 = arith.constant 0.000000e+00 : f32
    %23 = vector.broadcast %cst_14 : f32 to vector<8x128xf32>
    %24 = arith.maximumf %22, %23 : vector<8x128xf32>
    %25 = vector.extract_strided_slice %10 {offsets = [0, 2, 0], sizes = [8, 1, 128], strides = [1, 1, 1]} : vector<8x8x128xf32> to vector<8x1x128xf32>
    %26 = vector.shape_cast %25 : vector<8x1x128xf32> to vector<8x128xf32>
    %cst_15 = arith.constant dense<0.000000e+00> : vector<8x128xf32>
    %27 = tpu.matmul %24, %11, %cst_15 {dimension_numbers = #tpu.dot_dimension_numbers<[1], [0], [0], [1], [0, 0, 1, 1], [], []>} : vector<8x128xf32>, vector<128x128xf32>, vector<8x128xf32> -> vector<8x128xf32>
    %28 = arith.addf %26, %27 : vector<8x128xf32>
    %cst_16 = arith.constant 0.000000e+00 : f32
    %29 = vector.broadcast %cst_16 : f32 to vector<8x128xf32>
    %30 = arith.maximumf %28, %29 : vector<8x128xf32>
    %31 = vector.extract_strided_slice %10 {offsets = [0, 3, 0], sizes = [8, 1, 128], strides = [1, 1, 1]} : vector<8x8x128xf32> to vector<8x1x128xf32>
    %32 = vector.shape_cast %31 : vector<8x1x128xf32> to vector<8x128xf32>
    %cst_17 = arith.constant dense<0.000000e+00> : vector<8x128xf32>
    %33 = tpu.matmul %30, %11, %cst_17 {dimension_numbers = #tpu.dot_dimension_numbers<[1], [0], [0], [1], [0, 0, 1, 1], [], []>} : vector<8x128xf32>, vector<128x128xf32>, vector<8x128xf32> -> vector<8x128xf32>
    %34 = arith.addf %32, %33 : vector<8x128xf32>
    %cst_18 = arith.constant 0.000000e+00 : f32
    %35 = vector.broadcast %cst_18 : f32 to vector<8x128xf32>
    %36 = arith.maximumf %34, %35 : vector<8x128xf32>
    %37 = vector.extract_strided_slice %10 {offsets = [0, 4, 0], sizes = [8, 1, 128], strides = [1, 1, 1]} : vector<8x8x128xf32> to vector<8x1x128xf32>
    %38 = vector.shape_cast %37 : vector<8x1x128xf32> to vector<8x128xf32>
    %cst_19 = arith.constant dense<0.000000e+00> : vector<8x128xf32>
    %39 = tpu.matmul %36, %11, %cst_19 {dimension_numbers = #tpu.dot_dimension_numbers<[1], [0], [0], [1], [0, 0, 1, 1], [], []>} : vector<8x128xf32>, vector<128x128xf32>, vector<8x128xf32> -> vector<8x128xf32>
    %40 = arith.addf %38, %39 : vector<8x128xf32>
    %cst_20 = arith.constant 0.000000e+00 : f32
    %41 = vector.broadcast %cst_20 : f32 to vector<8x128xf32>
    %42 = arith.maximumf %40, %41 : vector<8x128xf32>
    %43 = vector.extract_strided_slice %10 {offsets = [0, 5, 0], sizes = [8, 1, 128], strides = [1, 1, 1]} : vector<8x8x128xf32> to vector<8x1x128xf32>
    %44 = vector.shape_cast %43 : vector<8x1x128xf32> to vector<8x128xf32>
    %cst_21 = arith.constant dense<0.000000e+00> : vector<8x128xf32>
    %45 = tpu.matmul %42, %11, %cst_21 {dimension_numbers = #tpu.dot_dimension_numbers<[1], [0], [0], [1], [0, 0, 1, 1], [], []>} : vector<8x128xf32>, vector<128x128xf32>, vector<8x128xf32> -> vector<8x128xf32>
    %46 = arith.addf %44, %45 : vector<8x128xf32>
    %cst_22 = arith.constant 0.000000e+00 : f32
    %47 = vector.broadcast %cst_22 : f32 to vector<8x128xf32>
    %48 = arith.maximumf %46, %47 : vector<8x128xf32>
    %49 = vector.extract_strided_slice %10 {offsets = [0, 6, 0], sizes = [8, 1, 128], strides = [1, 1, 1]} : vector<8x8x128xf32> to vector<8x1x128xf32>
    %50 = vector.shape_cast %49 : vector<8x1x128xf32> to vector<8x128xf32>
    %cst_23 = arith.constant dense<0.000000e+00> : vector<8x128xf32>
    %51 = tpu.matmul %48, %11, %cst_23 {dimension_numbers = #tpu.dot_dimension_numbers<[1], [0], [0], [1], [0, 0, 1, 1], [], []>} : vector<8x128xf32>, vector<128x128xf32>, vector<8x128xf32> -> vector<8x128xf32>
    %52 = arith.addf %50, %51 : vector<8x128xf32>
    %cst_24 = arith.constant 0.000000e+00 : f32
    %53 = vector.broadcast %cst_24 : f32 to vector<8x128xf32>
    %54 = arith.maximumf %52, %53 : vector<8x128xf32>
    %55 = vector.extract_strided_slice %10 {offsets = [0, 7, 0], sizes = [8, 1, 128], strides = [1, 1, 1]} : vector<8x8x128xf32> to vector<8x1x128xf32>
    %56 = vector.shape_cast %55 : vector<8x1x128xf32> to vector<8x128xf32>
    %cst_25 = arith.constant dense<0.000000e+00> : vector<8x128xf32>
    %57 = tpu.matmul %54, %11, %cst_25 {dimension_numbers = #tpu.dot_dimension_numbers<[1], [0], [0], [1], [0, 0, 1, 1], [], []>} : vector<8x128xf32>, vector<128x128xf32>, vector<8x128xf32> -> vector<8x128xf32>
    %58 = arith.addf %56, %57 : vector<8x128xf32>
    %cst_26 = arith.constant 0.000000e+00 : f32
    %59 = vector.broadcast %cst_26 : f32 to vector<8x128xf32>
    %60 = arith.maximumf %58, %59 : vector<8x128xf32>
    %c0_27 = arith.constant 0 : index
    %c0_28 = arith.constant 0 : index
    %61 = vector.load %arg9[%c0_27, %c0_28] : memref<8x128xf32, #tpu.memory_space<vmem>>, vector<8x128xf32>
    tpu.vector_store %arg9[%c0_27, %c0_28], %60 {strides = array<i32>} : memref<8x128xf32, #tpu.memory_space<vmem>>, vector<8x128xf32>,
    %c0_i32_29 = arith.constant 0 : i32
    %62 = arith.cmpi eq, %arg1, %c0_i32_29 : i32
    %63 = arith.extui %62 : i1 to i32
    %c0_i32_30 = arith.constant 0 : i32
    %64 = arith.cmpi ne, %63, %c0_i32_30 : i32
    scf.if %64 {
      %c0_31 = arith.constant 0 : index
      %c0_32 = arith.constant 0 : index
      %65 = vector.load %arg6[%c0_31, %c0_32] : memref<1x128xf32, #tpu.memory_space<vmem>>, vector<1x128xf32>
      %66 = vector.broadcast %65 : vector<1x128xf32> to vector<8x128xf32>
      %67 = arith.mulf %60, %66 : vector<8x128xf32>
      %cst_33 = arith.constant dense<0.000000e+00> : vector<8xf32>
      %68 = vector.multi_reduction <add>, %67, %cst_33 [1] : vector<8x128xf32> to vector<8xf32>
      %69 = vector.shape_cast %68 : vector<8xf32> to vector<8x1xf32>
      %c0_34 = arith.constant 0 : index
      %c0_35 = arith.constant 0 : index
      %70 = vector.load %arg7[%c0_34, %c0_35] : memref<1x1xf32, #tpu.memory_space<vmem>>, vector<1x1xf32>
      %71 = vector.broadcast %70 : vector<1x1xf32> to vector<8x1xf32>
      %72 = arith.addf %69, %71 : vector<8x1xf32>
      %73 = vector.shape_cast %72 : vector<8x1xf32> to vector<8x1xf32>
      %74 = vector.broadcast %73 : vector<8x1xf32> to vector<8x128xf32>
      %c0_36 = arith.constant 0 : index
      %c0_37 = arith.constant 0 : index
      %75 = vector.load %arg8[%c0_36, %c0_37] : memref<8x128xf32, #tpu.memory_space<vmem>>, vector<8x128xf32>
      tpu.vector_store %arg8[%c0_36, %c0_37], %74 {strides = array<i32>} : memref<8x128xf32, #tpu.memory_space<vmem>>, vector<8x128xf32>,
    } else {
    }
    return
  }
  func.func @transform_0(%arg0: i32, %arg1: i32) -> (i32, i32, i32) {
    %c0_i32 = arith.constant 0 : i32
    %c0_i32_0 = arith.constant 0 : i32
    return %arg0, %arg1, %c0_i32 : i32, i32, i32
  }
  func.func @transform_1(%arg0: i32, %arg1: i32) -> (i32, i32) {
    %c0_i32 = arith.constant 0 : i32
    %c0_i32_0 = arith.constant 0 : i32
    %c0_i32_1 = arith.constant 0 : i32
    return %c0_i32, %c0_i32_0 : i32, i32
  }
  func.func @transform_2(%arg0: i32, %arg1: i32) -> (i32, i32) {
    %c0_i32 = arith.constant 0 : i32
    %c0_i32_0 = arith.constant 0 : i32
    %c0_i32_1 = arith.constant 0 : i32
    return %c0_i32, %c0_i32_0 : i32, i32
  }
  func.func @transform_3(%arg0: i32, %arg1: i32) -> (i32, i32) {
    %c0_i32 = arith.constant 0 : i32
    %c0_i32_0 = arith.constant 0 : i32
    %c0_i32_1 = arith.constant 0 : i32
    return %c0_i32, %c0_i32_0 : i32, i32
  }
  func.func @transform_4(%arg0: i32, %arg1: i32) -> (i32, i32) {
    %c0_i32 = arith.constant 0 : i32
    %c0_i32_0 = arith.constant 0 : i32
    %c0_i32_1 = arith.constant 0 : i32
    return %c0_i32, %c0_i32_0 : i32, i32
  }
  func.func @transform_5(%arg0: i32, %arg1: i32) -> (i32, i32) {
    %c0_i32 = arith.constant 0 : i32
    %c0_i32_0 = arith.constant 0 : i32
    %c0_i32_1 = arith.constant 0 : i32
    return %c0_i32, %c0_i32_0 : i32, i32
  }
  func.func @transform_6(%arg0: i32, %arg1: i32) -> (i32, i32) {
    %c0_i32 = arith.constant 0 : i32
    %c0_i32_0 = arith.constant 0 : i32
    return %arg0, %c0_i32 : i32, i32
  }
}

</mosaic_0001>

<bundles_post_ra>
// kernel: tpu_custom_call.1
= control target key start
LH: loop header
LB: loop body
LE: loop exit
PB: predicated region body
PF: predicated region fallthrough
CT: control target
= control target key end

     0   :  { %s2517_s0 = inlined_call_operand.hbm [shape: f32[8,8,10], index: 0, kind: input, shape index: {}]   ;;  %s2518_s1 = inlined_call_operand.hbm [shape: f32[10,128], index: 1, kind: input, shape index: {}]   ;;  %s2519_s2 = inlined_call_operand.hbm [shape: f32[128,128], index: 2, kind: input, shape index: {}]   ;;  %s2520_s3 = inlined_call_operand.vmem [shape: f32[1,128], index: 3, kind: input, shape index: {}]   ;;  %s2521_s4 = inlined_call_operand.vmem [shape: f32[1,128], index: 4, kind: input, shape index: {}]   ;;  %s2522_s5 = inlined_call_operand.<no memory space> [shape: f32[1,1], index: 5, kind: input, shape index: {}]   ;;  %s2523_s6 = inlined_call_operand.hbm [shape: f32[8,128], index: 6, kind: output, shape index: {}]  }
   0x1   :  { %v11_v0 = vstv %s2522_s5 }
   0x2   :  { %12 = vst [vmem:[#allocation3] sm:$0x1] %v11_v0 }
   0x3   :  { %13 = vsyncpa [#allocation5], 0 }
   0x4   :  { %14 = vsyncpa [#allocation8], 0 }
   0x5   :  { %15 = vsyncpa [#allocation6], 0  ;;  %s2093_s23 = smov [#allocation7]   ;;  %s2094_s25 = smov [#allocation4]  }
   0x6   :  { %s33_s24 = sshll.u32 %s2093_s23, 4  ;;  %s21_s26 = sshll.u32 %s2094_s25, 4  ;;  %s34_s24 = int_to_ptr.vmem [resolvable:$true] %s33_s24  ;;  %s2142_s26 = int_to_ptr.vmem [resolvable:$true] %s21_s26 }
   0x7   :  { %s1999_s29 = scalar_lea.hbm %s2518_s1, 256 }
   0x8   :  { %p2000_p0 = scmp.ne.s32.totalorder %s2518_s1, %s1999_s29  ;;  %p2003_p1 = scmp.lt.u32.totalorder %s1999_s29, %s2518_s1 }
   0xa   :  { %p2005_p2 = pnand %p2003_p1, %p2000_p0 }
   0xc   :  { %2008 = shalt.err (!%p2005_p2)
}
   0xd   :  { %s2009_s9 = scalar_lea.vmem %s34_s24, 256  ;;  %p2014_p4 = scmp.lt.s32.totalorder %s34_s24, %s34_s24 }
   0xe   :  { %p2010_p3 = scmp.ne.s32.totalorder %s34_s24, %s2009_s9  ;;  %p2015_p5 = scmp.lt.s32.totalorder %s2009_s9, %s2009_s9 }
  0x10   :  { %p2016_p6 = por %p2015_p5, %p2014_p4 }
  0x12   :  { %p2017_p7 = pnand %p2016_p6, %p2010_p3 }
  0x14   :  { %2020 = shalt.err (!%p2017_p7)
}
  0x15   :  { %s2095_s10 = smov 128   ;;  %s2096_s11 = smov 8  }
  0x16   :  { %39 = dma.hbm_to_vmem [thread:$0]  %s2518_s1, 256, %s34_s24, [#allocation8], %s2095_s10, %s2095_s10, %s2096_s11  }
  0x17   :  { %s2021_s16 = scalar_lea.hbm %s2517_s0, 1024 }
  0x18   :  { %p2022_p8 = scmp.ne.s32.totalorder %s2517_s0, %s2021_s16  ;;  %p2025_p9 = scmp.lt.u32.totalorder %s2021_s16, %s2517_s0 }
  0x1a   :  { %p2027_p10 = pnand %p2025_p9, %p2022_p8 }
  0x1c   :  { %2030 = shalt.err (!%p2027_p10)
}
  0x1d   :  { %s2031_s21 = scalar_lea.vmem %s2142_s26, 1024  ;;  %p2036_p12 = scmp.lt.s32.totalorder %s2142_s26, %s2142_s26 }
  0x1e   :  { %p2032_p11 = scmp.ne.s32.totalorder %s2142_s26, %s2031_s21  ;;  %p2037_p13 = scmp.lt.s32.totalorder %s2031_s21, %s2031_s21 }
  0x20   :  { %p2038_p0 = por %p2037_p13, %p2036_p12 }
  0x22   :  { %p2039_p1 = pnand %p2038_p0, %p2032_p11 }
  0x24   :  { %2042 = shalt.err (!%p2039_p1)
}
  0x25   :  { %27 = dma.hbm_to_vmem [thread:$0]  %s2517_s0, 1024, %s2142_s26, [#allocation5], %s2095_s10, %s2095_s10, %s2096_s11  }
  0x26   :  { %s2097_s23 = smov [#allocation9]   ;;  %s2043_s28 = scalar_lea.hbm %s2519_s2, 2048 }
  0x27   :  { %s45_s24 = sshll.u32 %s2097_s23, 4  ;;  %p2044_p2 = scmp.ne.s32.totalorder %s2519_s2, %s2043_s28  ;;  %s46_s24 = int_to_ptr.vmem [resolvable:$true] %s45_s24 }
  0x28   :  { %p2047_p3 = scmp.lt.u32.totalorder %s2043_s28, %s2519_s2 }
  0x2a   :  { %p2049_p4 = pnand %p2047_p3, %p2044_p2 }
  0x2c   :  { %2052 = shalt.err (!%p2049_p4)
}
  0x2d   :  { %s2053_s8 = scalar_lea.vmem %s46_s24, 2048  ;;  %p2058_p6 = scmp.lt.s32.totalorder %s46_s24, %s46_s24 }
  0x2e   :  { %p2054_p5 = scmp.ne.s32.totalorder %s46_s24, %s2053_s8  ;;  %p2059_p7 = scmp.lt.s32.totalorder %s2053_s8, %s2053_s8 }
  0x30   :  { %p2060_p8 = por %p2059_p7, %p2058_p6 }
  0x32   :  { %p2061_p9 = pnand %p2060_p8, %p2054_p5 }
  0x34   :  { %2064 = shalt.err (!%p2061_p9)
}
  0x35   :  { %51 = dma.hbm_to_vmem [thread:$0]  %s2519_s2, 2048, %s46_s24, [#allocation8], %s2095_s10, %s2095_s10, %s2096_s11  }
  0x36   :  { %2087 = dma.done.wait [#allocation5], 1024  }
  0x37   :  { %2088 = vsyncadd [#allocation5], 4294966272 }
  0x38   :  { %2089 = dma.done.wait [#allocation8], 2304  }
  0x39   :  { %2090 = vsyncadd [#allocation8], 4294964992  ;;  %v2098_v1 = vmov 0.0|0.0   ;;  %vm2099_vm0 = vmmov 0   ;;  %v2100_v2 = vmov 0.0   ;;  %v223_v3 = vld [vmem:[#allocation9] sm:$0xff] }
  0x3a   :  { %1794 = vmatprep.subr.bf16.mxu1 %v2098_v1  ;;  %1540 = vmatprep.mubr.msk.f32.mxu1 %vm2099_vm0, %v2100_v2  ;;  %v224_v4 = vld [vmem:[#allocation9 + $0x8] sm:$0xff]  ;;  %v225_v5 = vld [vmem:[#allocation9 + $0x10] sm:$0xff]  ;;  %vm114_vm1 = vcmask 1041408   ;;  %v226_v7 = vld [vmem:[#allocation9 + $0x18] sm:$0xff]  ;;  %vm89_vm2 = vcmask 80896   ;;  %vm2101_vm3 = vmmov 1  }
  0x3b   :  { %v2197_v6 = vpack.c.bf16 %v224_v4, %v223_v3  ;;  %v80_v8 = vld [vmem:[#allocation7] sm:$0xff]  ;;  %v2200_v9 = vpack.c.bf16 %v226_v7, %v225_v5  ;;  %v81_v10 = vld [vmem:[#allocation7 + $0x8] sm:$0x3]  ;;  %vm1789_vm4 = vmpackc.low %vm114_vm1, %vm2101_vm3  ;;  %vm351_vm5 = vcmask 1041409   ;;  %vm354_vm6 = vcmask 1042434  }
  0x3c   :  { %v227_v11 = vld [vmem:[#allocation9 + $0x20] sm:$0xff]  ;;  %v228_v12 = vld [vmem:[#allocation9 + $0x28] sm:$0xff]  ;;  %v1788_v13 = vpack.c.bf16 %v81_v10, %v80_v8  ;;  %v72_v14 = vld [vmem:[#allocation4] sm:$0xff]  ;;  %vm357_vm7 = vcmask 1043459   ;;  %vm360_vm8 = vcmask 1044484   ;;  %vm363_vm9 = vcmask 1045509  }
  0x3d   :  { %1796 = vmatpush3.bf16.msra.mxu1 %v2197_v6  ;;  %1496 = vmatprep.mubr.msk.f32.mxu0 %vm89_vm2, %v72_v14  ;;  %v2205_v15 = vpack.c.bf16 %v228_v12, %v227_v11  ;;  %v73_v16 = vld [vmem:[#allocation4 + $0x8] sm:$0xff]  ;;  %v229_v17 = vld [vmem:[#allocation9 + $0x30] sm:$0xff]  ;;  %v74_v19 = vld [vmem:[#allocation4 + $0x10] sm:$0xff]  ;;  %vm366_vm10 = vcmask 1046534   ;;  %vm369_vm11 = vcmask 1047559   ;;  %vm1293_vm12 = vcmask 1046528  }
  0x3e   :  { %1797 = vmatprep.subr.bf16.mxu1 %v2098_v1  ;;  %1790 = vmatprep.subr.msk.bf16.mxu0 %vm1789_vm4, %v1788_v13  ;;  %v230_v18 = vld [vmem:[#allocation9 + $0x38] sm:$0xff]  ;;  %v75_v21 = vld [vmem:[#allocation4 + $0x18] sm:$0xff]  ;;  %v231_v22 = vld [vmem:[#allocation9 + $0x40] sm:$0xff] }
  0x3f   :  { %1793 = vmatpush3.bf16.msk.msra.mxu0 %vm1789_vm4, %v1788_v13  ;;  %v2211_v20 = vpack.c.bf16 %v230_v18, %v229_v17  ;;  %v232_v23 = vld [vmem:[#allocation9 + $0x48] sm:$0xff]  ;;  %v76_v24 = vld [vmem:[#allocation4 + $0x20] sm:$0xff]  ;;  %v77_v26 = vld [vmem:[#allocation4 + $0x28] sm:$0xff] }
  0x40   :  { %1818 = vmatprep.subr.bf16.mxu0 %v2098_v1  ;;  %v2219_v25 = vpack.c.bf16 %v232_v23, %v231_v22  ;;  %v233_v27 = vld [vmem:[#allocation9 + $0x50] sm:$0xff]  ;;  %v234_v28 = vld [vmem:[#allocation9 + $0x58] sm:$0xff]  ;;  %v78_v29 = vld [vmem:[#allocation4 + $0x30] sm:$0xff] }
  0x41   :  { %1799 = vmatpush3.bf16.msra.mxu1 %v2200_v9  ;;  %v2227_v30 = vpack.c.bf16 %v234_v28, %v233_v27  ;;  %v79_v31 = vld [vmem:[#allocation4 + $0x38] sm:$0xff]  ;;  %v235_v32 = vld [vmem:[#allocation9 + $0x60] sm:$0xff]  ;;  %v237_v35 = vld [vmem:[#allocation9 + $0x70] sm:$0xff] }
  0x42   :  { %1800 = vmatprep.subr.bf16.mxu1 %v2098_v1  ;;  %1497 = vmatmul.mubr.msk.f32.vlgmr.msra.gmra.mrb[0].mxu0 %vm89_vm2, %v73_v16  ;;  %v236_v33 = vld [vmem:[#allocation9 + $0x68] sm:$0xff]  ;;  %v238_v36 = vld [vmem:[#allocation9 + $0x78] sm:$0xff] }
  0x43   :  { %1499 = vmatprep.mubr.msk.f32.mxu0 %vm89_vm2, %v74_v19  ;;  %1820 = vmatpush3.bf16.msra.mxu0 %v2197_v6  ;;  %v2235_v34 = vpack.c.bf16 %v236_v33, %v235_v32  ;;  %v2243_v37 = vpack.c.bf16 %v238_v36, %v237_v35  ;;  %v1334_v46 = vld [vmem:[%s2520_s3] ss:$0 sm:$0xff] }
  0x44   :  { %1821 = vmatprep.subr.bf16.mxu0 %v2098_v1 }
  0x45   :  { %1802 = vmatpush3.bf16.msra.mxu1 %v2205_v15 }
  0x46   :  { %1803 = vmatprep.subr.bf16.mxu1 %v2098_v1  ;;  %1500 = vmatmul.mubr.msk.f32.gmra.mrb[2].mxu0 %vm89_vm2, %v75_v21 }
  0x47   :  { %1502 = vmatprep.mubr.msk.f32.mxu0 %vm89_vm2, %v76_v24  ;;  %1823 = vmatpush3.bf16.msra.mxu0 %v2200_v9 }
  0x48   :  { %1824 = vmatprep.subr.bf16.mxu0 %v2098_v1 }
  0x49   :  { %1805 = vmatpush3.bf16.msra.mxu1 %v2211_v20 }
  0x4a   :  { %1806 = vmatprep.subr.bf16.mxu1 %v2098_v1  ;;  %1503 = vmatmul.mubr.msk.f32.gmra.mrb[4].mxu0 %vm89_vm2, %v77_v26 }
  0x4b   :  { %1505 = vmatprep.mubr.msk.f32.mxu0 %vm89_vm2, %v78_v29  ;;  %1826 = vmatpush3.bf16.msra.mxu0 %v2205_v15 }
  0x4c   :  { %1827 = vmatprep.subr.bf16.mxu0 %v2098_v1 }
  0x4d   :  { %1808 = vmatpush3.bf16.msra.mxu1 %v2219_v25 }
  0x4e   :  { %1809 = vmatprep.subr.bf16.mxu1 %v2098_v1  ;;  %1506 = vmatmul.mubr.msk.f32.gmra.mrb[6].mxu0 %vm89_vm2, %v79_v31 }
  0x4f   :  { %1575 = vmatprep.mubr.msk.f32.mxu0 %vm2099_vm0, %v2100_v2  ;;  %1829 = vmatpush3.bf16.msra.mxu0 %v2211_v20 }
  0x50   :  { %1830 = vmatprep.subr.bf16.mxu0 %v2098_v1 }
  0x51   :  { %1811 = vmatpush3.bf16.msra.mxu1 %v2227_v30 }
  0x52   :  { %1812 = vmatprep.subr.bf16.mxu1 %v2098_v1 }
  0x53   :  { %1832 = vmatpush3.bf16.msra.mxu0 %v2219_v25 }
  0x54   :  { %1833 = vmatprep.subr.bf16.mxu0 %v2098_v1 }
  0x55   :  { %1814 = vmatpush3.bf16.msra.mxu1 %v2235_v34 }
  0x56   :  { %1815 = vmatprep.subr.bf16.mxu1 %v2098_v1 }
  0x57   :  { %1835 = vmatpush3.bf16.msra.mxu0 %v2227_v30 }
  0x58   :  { %1836 = vmatprep.subr.bf16.mxu0 %v2098_v1 }
  0x59   :  { %1817 = vmatpush3.bf16.msra.mxu1 %v2243_v37 }
  0x5a   :  { %1842 = vmatprep.subr.bf16.mxu1 %v2098_v1 }
  0x5b   :  { %1838 = vmatpush3.bf16.msra.mxu0 %v2235_v34 }
  0x5c   :  { %1541 = vmatmul.mubr.f32.vlgmr.msra.gmra.mrb[0].mxu1 %v2100_v2  ;;  %1839 = vmatprep.subr.bf16.mxu0 %v2098_v1 }
  0x5d   :  { %1844 = vmatpush3.bf16.msra.mxu1 %v2197_v6  ;;  %1610 = vmatprep.mubr.msk.f32.mxu1 %vm2099_vm0, %v2100_v2 }
  0x5e   :  { %1845 = vmatprep.subr.bf16.mxu1 %v2098_v1 }
  0x5f   :  { %1841 = vmatpush3.bf16.msra.mxu0 %v2243_v37 }
  0x60   :  { %1866 = vmatprep.subr.bf16.mxu0 %v2098_v1 }
  0x61   :  { %1847 = vmatpush3.bf16.msra.mxu1 %v2200_v9 }
  0x62   :  { %1848 = vmatprep.subr.bf16.mxu1 %v2098_v1 }
  0x65   :  { %1850 = vmatpush3.bf16.msra.mxu1 %v2205_v15 }
  0x66   :  { %1851 = vmatprep.subr.bf16.mxu1 %v2098_v1 }
  0x69   :  { %1853 = vmatpush3.bf16.msra.mxu1 %v2211_v20 }
  0x6a   :  { %1854 = vmatprep.subr.bf16.mxu1 %v2098_v1 }
  0x6d   :  { %1856 = vmatpush3.bf16.msra.mxu1 %v2219_v25 }
  0x6e   :  { %1857 = vmatprep.subr.bf16.mxu1 %v2098_v1 }
  0x71   :  { %1859 = vmatpush3.bf16.msra.mxu1 %v2227_v30 }
  0x72   :  { %1860 = vmatprep.subr.bf16.mxu1 %v2098_v1 }
  0x75   :  { %1862 = vmatpush3.bf16.msra.mxu1 %v2235_v34 }
  0x76   :  { %1863 = vmatprep.subr.bf16.mxu1 %v2098_v1 }
  0x79   :  { %1865 = vmatpush3.bf16.msra.mxu1 %v2243_v37 }
  0x7a   :  { %1890 = vmatprep.subr.bf16.mxu1 %v2098_v1 }
 0x115   :  { %v1498_v38 = vpop.f32.mrb[0].mxu0 }
 0x116   :  { %v184_v39 = vpop.f32.mrb[1].mxu0  ;;  %v2278_v47 = vadd.f32 %v1498_v38, %v1334_v46 }
 0x117   :  { %v2280_v48 = vadd.f32 %v1334_v46, %v184_v39 }
 0x119   :  { %v1501_v40 = vpop.f32.mrb[2].mxu0 }
 0x11a   :  { %v194_v41 = vpop.f32.mrb[3].mxu0  ;;  %v2282_v49 = vadd.f32 %v1501_v40, %v1334_v46 }
 0x11b   :  { %v2286_v51 = vadd.f32 %v1334_v46, %v194_v41 }
 0x11d   :  { %v1504_v42 = vpop.f32.mrb[4].mxu0 }
 0x11e   :  { %v204_v43 = vpop.f32.mrb[5].mxu0  ;;  %v2288_v52 = vadd.f32 %v1504_v42, %v1334_v46 }
 0x11f   :  { %v2284_v50 = vadd.f32 %v1334_v46, %v204_v43 }
 0x121   :  { %v1507_v44 = vpop.f32.mrb[6].mxu0 }
 0x122   :  { %v214_v45 = vpop.f32.mrb[7].mxu0  ;;  %v2290_v53 = vadd.f32 %v1507_v44, %v1334_v46 }
 0x123   :  { %v2292_v54 = vadd.f32 %v1334_v46, %v214_v45 }
 0x12f   :  { %v306_v55 = vpop.f32.mrb[0].mxu1 }
 0x130   :  { %v311_v56 = vrot.slane %v306_v55, 1  ;;  %v312_v57 = vrot.slane %v306_v55, 2  ;;  %v313_v58 = vrot.slane %v306_v55, 3  ;;  %v314_v59 = vrot.slane %v306_v55, 4  ;;  %v1542_v60 = vpop.f32.mrb[1].mxu1 }
 0x131   :  { %v326_v61 = vadd.f32 %v306_v55, %v2280_v48  ;;  %v315_v62 = vrot.slane %v306_v55, 5  ;;  %v316_v63 = vrot.slane %v306_v55, 6  ;;  %v317_v0 = vrot.slane %v306_v55, 7 }
 0x132   :  { %v327_v3 = vadd.f32 %v311_v56, %v2278_v47  ;;  %v328_v4 = vadd.f32 %v312_v57, %v2286_v51  ;;  %v329_v5 = vadd.f32 %v313_v58, %v2282_v49  ;;  %v330_v7 = vadd.f32 %v314_v59, %v2284_v50 }
 0x133   :  { %v331_v8 = vadd.f32 %v315_v62, %v2288_v52  ;;  %v332_v10 = vadd.f32 %v316_v63, %v2292_v54  ;;  %v333_v12 = vadd.f32 %v317_v0, %v2290_v53  ;;  %v334_v17 = vmax.f32 %v326_v61, 0.0 }
 0x134   :  { %v335_v11 = vmax.f32 %v327_v3, 0.0  ;;  %v336_v13 = vmax.f32 %v328_v4, 0.0  ;;  %v337_v14 = vmax.f32 %v329_v5, 0.0  ;;  %v338_v16 = vmax.f32 %v330_v7, 0.0 }
 0x135   :  { %v339_v19 = vmax.f32 %v331_v8, 0.0  ;;  %v340_v22 = vmax.f32 %v332_v10, 0.0  ;;  %v341_v23 = vmax.f32 %v333_v12, 0.0 }
 0x136   :  { %v350_v18 = vrot.slane %v335_v11, 7  ;;  %v353_v21 = vrot.slane %v336_v13, 6  ;;  %v356_v26 = vrot.slane %v337_v14, 5  ;;  %v359_v28 = vrot.slane %v338_v16, 4 }
 0x137   :  { %v362_v31 = vrot.slane %v339_v19, 3  ;;  %v365_v33 = vrot.slane %v340_v22, 2  ;;  %v368_v36 = vrot.slane %v341_v23, 1 }
 0x138   :  { %v352_v24 = vsel %vm351_vm5, %v350_v18, %v334_v17 }
 0x139   :  { %v355_v27 = vsel %vm354_vm6, %v353_v21, %v352_v24 }
 0x13a   :  { %v358_v29 = vsel %vm357_vm7, %v356_v26, %v355_v27 }
 0x13b   :  { %v361_v32 = vsel %vm360_vm8, %v359_v28, %v358_v29 }
 0x13c   :  { %v364_v35 = vsel %vm363_vm9, %v362_v31, %v361_v32 }
 0x13d   :  { %v367_v38 = vsel %vm366_vm10, %v365_v33, %v364_v35 }
 0x13e   :  { %v370_v39 = vsel %vm369_vm11, %v368_v36, %v367_v38 }
 0x13f   :  { %1576 = vmatmul.mubr.f32.vlgmr.msra.gmra.mrb[8].mxu0 %v370_v39 }
 0x140   :  { %1868 = vmatpush3.bf16.msra.mxu0 %v2197_v6  ;;  %1645 = vmatprep.mubr.msk.f32.mxu0 %vm2099_vm0, %v2100_v2 }
 0x141   :  { %1869 = vmatprep.subr.bf16.mxu0 %v2098_v1 }
 0x144   :  { %1871 = vmatpush3.bf16.msra.mxu0 %v2200_v9 }
 0x145   :  { %1872 = vmatprep.subr.bf16.mxu0 %v2098_v1 }
 0x148   :  { %1874 = vmatpush3.bf16.msra.mxu0 %v2205_v15 }
 0x149   :  { %1875 = vmatprep.subr.bf16.mxu0 %v2098_v1 }
 0x14c   :  { %1877 = vmatpush3.bf16.msra.mxu0 %v2211_v20 }
 0x14d   :  { %1878 = vmatprep.subr.bf16.mxu0 %v2098_v1 }
 0x150   :  { %1880 = vmatpush3.bf16.msra.mxu0 %v2219_v25 }
 0x151   :  { %1881 = vmatprep.subr.bf16.mxu0 %v2098_v1 }
 0x154   :  { %1883 = vmatpush3.bf16.msra.mxu0 %v2227_v30 }
 0x155   :  { %1884 = vmatprep.subr.bf16.mxu0 %v2098_v1 }
 0x158   :  { %1886 = vmatpush3.bf16.msra.mxu0 %v2235_v34 }
 0x159   :  { %1887 = vmatprep.subr.bf16.mxu0 %v2098_v1 }
 0x15c   :  { %1889 = vmatpush3.bf16.msra.mxu0 %v2243_v37 }
 0x15d   :  { %1914 = vmatprep.subr.bf16.mxu0 %v2098_v1 }
 0x212   :  { %v438_v40 = vpop.f32.mrb[8].mxu0 }
 0x213   :  { %v443_v41 = vrot.slane %v438_v40, 7  ;;  %v444_v42 = vrot.slane %v438_v40, 1  ;;  %v445_v43 = vrot.slane %v438_v40, 2  ;;  %v1577_v44 = vpop.f32.mrb[9].mxu0  ;;  %v446_v45 = vrot.slane %v438_v40, 3 }
 0x214   :  { %v447_v46 = vrot.slane %v438_v40, 4  ;;  %v448_v55 = vrot.slane %v438_v40, 5  ;;  %v449_v56 = vrot.slane %v438_v40, 6  ;;  %v459_v58 = vadd.f32 %v438_v40, %v2278_v47 }
 0x215   :  { %v458_v57 = vadd.f32 %v443_v41, %v2280_v48  ;;  %v460_v59 = vadd.f32 %v444_v42, %v2286_v51  ;;  %v461_v60 = vadd.f32 %v445_v43, %v2282_v49  ;;  %v462_v61 = vadd.f32 %v446_v45, %v2284_v50 }
 0x216   :  { %v463_v62 = vadd.f32 %v447_v46, %v2288_v52  ;;  %v464_v63 = vadd.f32 %v448_v55, %v2292_v54  ;;  %v465_v0 = vadd.f32 %v449_v56, %v2290_v53  ;;  %v467_v8 = vmax.f32 %v459_v58, 0.0 }
 0x217   :  { %v466_v3 = vmax.f32 %v458_v57, 0.0  ;;  %v468_v4 = vmax.f32 %v460_v59, 0.0  ;;  %v469_v5 = vmax.f32 %v461_v60, 0.0  ;;  %v470_v7 = vmax.f32 %v462_v61, 0.0 }
 0x218   :  { %v471_v10 = vmax.f32 %v463_v62, 0.0  ;;  %v472_v13 = vmax.f32 %v464_v63, 0.0  ;;  %v473_v14 = vmax.f32 %v465_v0, 0.0 }
 0x219   :  { %v482_v11 = vrot.slane %v466_v3, 1  ;;  %v484_v12 = vrot.slane %v468_v4, 7  ;;  %v486_v17 = vrot.slane %v469_v5, 6  ;;  %v488_v19 = vrot.slane %v470_v7, 5 }
 0x21a   :  { %v490_v22 = vrot.slane %v471_v10, 4  ;;  %v492_v24 = vrot.slane %v472_v13, 3  ;;  %v494_v27 = vrot.slane %v473_v14, 2 }
 0x21b   :  { %v483_v16 = vsel %vm351_vm5, %v467_v8, %v482_v11 }
 0x21c   :  { %v485_v18 = vsel %vm354_vm6, %v484_v12, %v483_v16 }
 0x21d   :  { %v487_v21 = vsel %vm357_vm7, %v486_v17, %v485_v18 }
 0x21e   :  { %v489_v23 = vsel %vm360_vm8, %v488_v19, %v487_v21 }
 0x21f   :  { %v491_v26 = vsel %vm363_vm9, %v490_v22, %v489_v23 }
 0x220   :  { %v493_v28 = vsel %vm366_vm10, %v492_v24, %v491_v26 }
 0x221   :  { %v495_v29 = vsel %vm369_vm11, %v494_v27, %v493_v28 }
 0x222   :  { %1611 = vmatmul.mubr.f32.vlgmr.msra.gmra.mrb[2].mxu1 %v495_v29 }
 0x223   :  { %1892 = vmatpush3.bf16.msra.mxu1 %v2197_v6  ;;  %1680 = vmatprep.mubr.msk.f32.mxu1 %vm2099_vm0, %v2100_v2 }
 0x224   :  { %1893 = vmatprep.subr.bf16.mxu1 %v2098_v1 }
 0x227   :  { %1895 = vmatpush3.bf16.msra.mxu1 %v2200_v9 }
 0x228   :  { %1896 = vmatprep.subr.bf16.mxu1 %v2098_v1 }
 0x22b   :  { %1898 = vmatpush3.bf16.msra.mxu1 %v2205_v15 }
 0x22c   :  { %1899 = vmatprep.subr.bf16.mxu1 %v2098_v1 }
 0x22f   :  { %1901 = vmatpush3.bf16.msra.mxu1 %v2211_v20 }
 0x230   :  { %1902 = vmatprep.subr.bf16.mxu1 %v2098_v1 }
 0x233   :  { %1904 = vmatpush3.bf16.msra.mxu1 %v2219_v25 }
 0x234   :  { %1905 = vmatprep.subr.bf16.mxu1 %v2098_v1 }
 0x237   :  { %1907 = vmatpush3.bf16.msra.mxu1 %v2227_v30 }
 0x238   :  { %1908 = vmatprep.subr.bf16.mxu1 %v2098_v1 }
 0x23b   :  { %1910 = vmatpush3.bf16.msra.mxu1 %v2235_v34 }
 0x23c   :  { %1911 = vmatprep.subr.bf16.mxu1 %v2098_v1 }
 0x23f   :  { %1913 = vmatpush3.bf16.msra.mxu1 %v2243_v37 }
 0x240   :  { %1938 = vmatprep.subr.bf16.mxu1 %v2098_v1 }
 0x2f5   :  { %v563_v31 = vpop.f32.mrb[2].mxu1 }
 0x2f6   :  { %v568_v32 = vrot.slane %v563_v31, 6  ;;  %v569_v33 = vrot.slane %v563_v31, 7  ;;  %v570_v35 = vrot.slane %v563_v31, 1  ;;  %v1612_v36 = vpop.f32.mrb[3].mxu1  ;;  %v571_v38 = vrot.slane %v563_v31, 2 }
 0x2f7   :  { %v572_v39 = vrot.slane %v563_v31, 3  ;;  %v573_v40 = vrot.slane %v563_v31, 4  ;;  %v574_v41 = vrot.slane %v563_v31, 5  ;;  %v585_v46 = vadd.f32 %v563_v31, %v2286_v51 }
 0x2f8   :  { %v583_v42 = vadd.f32 %v568_v32, %v2280_v48  ;;  %v584_v43 = vadd.f32 %v569_v33, %v2278_v47  ;;  %v586_v44 = vadd.f32 %v570_v35, %v2282_v49  ;;  %v587_v45 = vadd.f32 %v571_v38, %v2284_v50 }
 0x2f9   :  { %v588_v55 = vadd.f32 %v572_v39, %v2288_v52  ;;  %v589_v56 = vadd.f32 %v573_v40, %v2292_v54  ;;  %v590_v57 = vadd.f32 %v574_v41, %v2290_v53  ;;  %v593_v3 = vmax.f32 %v585_v46, 0.0 }
 0x2fa   :  { %v591_v58 = vmax.f32 %v583_v42, 0.0  ;;  %v592_v59 = vmax.f32 %v584_v43, 0.0  ;;  %v594_v60 = vmax.f32 %v586_v44, 0.0  ;;  %v595_v61 = vmax.f32 %v587_v45, 0.0 }
 0x2fb   :  { %v596_v62 = vmax.f32 %v588_v55, 0.0  ;;  %v597_v4 = vmax.f32 %v589_v56, 0.0  ;;  %v598_v5 = vmax.f32 %v590_v57, 0.0 }
 0x2fc   :  { %v607_v63 = vrot.slane %v591_v58, 2  ;;  %v608_v0 = vrot.slane %v592_v59, 1  ;;  %v611_v8 = vrot.slane %v594_v60, 7  ;;  %v613_v11 = vrot.slane %v595_v61, 6 }
 0x2fd   :  { %v615_v13 = vrot.slane %v596_v62, 5  ;;  %v617_v16 = vrot.slane %v597_v4, 4  ;;  %v619_v18 = vrot.slane %v598_v5, 3 }
 0x2fe   :  { %v609_v7 = vsel %vm351_vm5, %v608_v0, %v607_v63 }
 0x2ff   :  { %v610_v10 = vsel %vm354_vm6, %v593_v3, %v609_v7 }
 0x300   :  { %v612_v12 = vsel %vm357_vm7, %v611_v8, %v610_v10 }
 0x301   :  { %v614_v14 = vsel %vm360_vm8, %v613_v11, %v612_v12 }
 0x302   :  { %v616_v17 = vsel %vm363_vm9, %v615_v13, %v614_v14 }
 0x303   :  { %v618_v19 = vsel %vm366_vm10, %v617_v16, %v616_v17 }
 0x304   :  { %v620_v21 = vsel %vm369_vm11, %v619_v18, %v618_v19 }
 0x305   :  { %1646 = vmatmul.mubr.f32.vlgmr.msra.gmra.mrb[10].mxu0 %v620_v21 }
 0x306   :  { %1916 = vmatpush3.bf16.msra.mxu0 %v2197_v6  ;;  %1715 = vmatprep.mubr.msk.f32.mxu0 %vm2099_vm0, %v2100_v2 }
 0x307   :  { %1917 = vmatprep.subr.bf16.mxu0 %v2098_v1 }
 0x30a   :  { %1919 = vmatpush3.bf16.msra.mxu0 %v2200_v9 }
 0x30b   :  { %1920 = vmatprep.subr.bf16.mxu0 %v2098_v1 }
 0x30e   :  { %1922 = vmatpush3.bf16.msra.mxu0 %v2205_v15 }
 0x30f   :  { %1923 = vmatprep.subr.bf16.mxu0 %v2098_v1 }
 0x312   :  { %1925 = vmatpush3.bf16.msra.mxu0 %v2211_v20 }
 0x313   :  { %1926 = vmatprep.subr.bf16.mxu0 %v2098_v1 }
 0x316   :  { %1928 = vmatpush3.bf16.msra.mxu0 %v2219_v25 }
 0x317   :  { %1929 = vmatprep.subr.bf16.mxu0 %v2098_v1 }
 0x31a   :  { %1931 = vmatpush3.bf16.msra.mxu0 %v2227_v30 }
 0x31b   :  { %1932 = vmatprep.subr.bf16.mxu0 %v2098_v1 }
 0x31e   :  { %1934 = vmatpush3.bf16.msra.mxu0 %v2235_v34 }
 0x31f   :  { %1935 = vmatprep.subr.bf16.mxu0 %v2098_v1 }
 0x322   :  { %1937 = vmatpush3.bf16.msra.mxu0 %v2243_v37 }
 0x323   :  { %1962 = vmatprep.subr.bf16.mxu0 %v2098_v1 }
 0x3d8   :  { %v688_v22 = vpop.f32.mrb[10].mxu0 }
 0x3d9   :  { %v693_v23 = vrot.slane %v688_v22, 5  ;;  %v694_v24 = vrot.slane %v688_v22, 6  ;;  %v695_v26 = vrot.slane %v688_v22, 7  ;;  %v1647_v27 = vpop.f32.mrb[11].mxu0  ;;  %v696_v28 = vrot.slane %v688_v22, 1 }
 0x3da   :  { %v697_v29 = vrot.slane %v688_v22, 2  ;;  %v698_v31 = vrot.slane %v688_v22, 3  ;;  %v699_v32 = vrot.slane %v688_v22, 4  ;;  %v711_v39 = vadd.f32 %v688_v22, %v2282_v49 }
 0x3db   :  { %v708_v33 = vadd.f32 %v693_v23, %v2280_v48  ;;  %v709_v35 = vadd.f32 %v694_v24, %v2278_v47  ;;  %v710_v36 = vadd.f32 %v695_v26, %v2286_v51  ;;  %v712_v38 = vadd.f32 %v696_v28, %v2284_v50 }
 0x3dc   :  { %v713_v40 = vadd.f32 %v697_v29, %v2288_v52  ;;  %v714_v41 = vadd.f32 %v698_v31, %v2292_v54  ;;  %v715_v42 = vadd.f32 %v699_v32, %v2290_v53  ;;  %v719_v60 = vmax.f32 %v711_v39, 0.0 }
 0x3dd   :  { %v716_v43 = vmax.f32 %v708_v33, 0.0  ;;  %v717_v44 = vmax.f32 %v709_v35, 0.0  ;;  %v718_v45 = vmax.f32 %v710_v36, 0.0  ;;  %v720_v46 = vmax.f32 %v712_v38, 0.0 }
 0x3de   :  { %v721_v55 = vmax.f32 %v713_v40, 0.0  ;;  %v722_v59 = vmax.f32 %v714_v41, 0.0  ;;  %v723_v61 = vmax.f32 %v715_v42, 0.0 }
 0x3df   :  { %v732_v56 = vrot.slane %v716_v43, 3  ;;  %v733_v57 = vrot.slane %v717_v44, 2  ;;  %v735_v58 = vrot.slane %v718_v45, 1  ;;  %v738_v0 = vrot.slane %v720_v46, 7 }
 0x3e0   :  { %v740_v4 = vrot.slane %v721_v55, 6  ;;  %v742_v7 = vrot.slane %v722_v59, 5  ;;  %v744_v10 = vrot.slane %v723_v61, 4 }
 0x3e1   :  { %v734_v62 = vsel %vm351_vm5, %v733_v57, %v732_v56 }
 0x3e2   :  { %v736_v63 = vsel %vm354_vm6, %v735_v58, %v734_v62 }
 0x3e3   :  { %v737_v3 = vsel %vm357_vm7, %v719_v60, %v736_v63 }
 0x3e4   :  { %v739_v5 = vsel %vm360_vm8, %v738_v0, %v737_v3 }
 0x3e5   :  { %v741_v8 = vsel %vm363_vm9, %v740_v4, %v739_v5 }
 0x3e6   :  { %v743_v11 = vsel %vm366_vm10, %v742_v7, %v741_v8 }
 0x3e7   :  { %v745_v12 = vsel %vm369_vm11, %v744_v10, %v743_v11 }
 0x3e8   :  { %1681 = vmatmul.mubr.f32.vlgmr.msra.gmra.mrb[4].mxu1 %v745_v12 }
 0x3e9   :  { %1940 = vmatpush3.bf16.msra.mxu1 %v2197_v6  ;;  %1750 = vmatprep.mubr.msk.f32.mxu1 %vm2099_vm0, %v2100_v2 }
 0x3ea   :  { %1941 = vmatprep.subr.bf16.mxu1 %v2098_v1 }
 0x3ed   :  { %1943 = vmatpush3.bf16.msra.mxu1 %v2200_v9 }
 0x3ee   :  { %1944 = vmatprep.subr.bf16.mxu1 %v2098_v1 }
 0x3f1   :  { %1946 = vmatpush3.bf16.msra.mxu1 %v2205_v15 }
 0x3f2   :  { %1947 = vmatprep.subr.bf16.mxu1 %v2098_v1 }
 0x3f5   :  { %1949 = vmatpush3.bf16.msra.mxu1 %v2211_v20 }
 0x3f6   :  { %1950 = vmatprep.subr.bf16.mxu1 %v2098_v1 }
 0x3f9   :  { %1952 = vmatpush3.bf16.msra.mxu1 %v2219_v25 }
 0x3fa   :  { %1953 = vmatprep.subr.bf16.mxu1 %v2098_v1 }
 0x3fd   :  { %1955 = vmatpush3.bf16.msra.mxu1 %v2227_v30 }
 0x3fe   :  { %1956 = vmatprep.subr.bf16.mxu1 %v2098_v1 }
 0x401   :  { %1958 = vmatpush3.bf16.msra.mxu1 %v2235_v34 }
 0x402   :  { %1959 = vmatprep.subr.bf16.mxu1 %v2098_v1 }
 0x405   :  { %1961 = vmatpush3.bf16.msra.mxu1 %v2243_v37 }
 0x4bb   :  { %v813_v13 = vpop.f32.mrb[4].mxu1 }
 0x4bc   :  { %v818_v14 = vrot.slane %v813_v13, 4  ;;  %v819_v16 = vrot.slane %v813_v13, 5  ;;  %v820_v17 = vrot.slane %v813_v13, 6  ;;  %v821_v18 = vrot.slane %v813_v13, 7  ;;  %v1682_v19 = vpop.f32.mrb[5].mxu1 }
 0x4bd   :  { %v822_v21 = vrot.slane %v813_v13, 1  ;;  %v823_v22 = vrot.slane %v813_v13, 2  ;;  %v824_v23 = vrot.slane %v813_v13, 3  ;;  %v837_v39 = vadd.f32 %v813_v13, %v2284_v50 }
 0x4be   :  { %v833_v24 = vadd.f32 %v818_v14, %v2280_v48  ;;  %v834_v26 = vadd.f32 %v819_v16, %v2278_v47  ;;  %v835_v27 = vadd.f32 %v820_v17, %v2286_v51  ;;  %v836_v28 = vadd.f32 %v821_v18, %v2282_v49 }
 0x4bf   :  { %v838_v29 = vadd.f32 %v822_v21, %v2288_v52  ;;  %v839_v31 = vadd.f32 %v823_v22, %v2292_v54  ;;  %v840_v32 = vadd.f32 %v824_v23, %v2290_v53  ;;  %v845_v56 = vmax.f32 %v837_v39, 0.0 }
 0x4c0   :  { %v841_v33 = vmax.f32 %v833_v24, 0.0  ;;  %v842_v35 = vmax.f32 %v834_v26, 0.0  ;;  %v843_v36 = vmax.f32 %v835_v27, 0.0  ;;  %v844_v38 = vmax.f32 %v836_v28, 0.0 }
 0x4c1   :  { %v846_v40 = vmax.f32 %v838_v29, 0.0  ;;  %v847_v44 = vmax.f32 %v839_v31, 0.0  ;;  %v848_v45 = vmax.f32 %v840_v32, 0.0 }
 0x4c2   :  { %v857_v41 = vrot.slane %v841_v33, 4  ;;  %v858_v42 = vrot.slane %v842_v35, 3  ;;  %v860_v43 = vrot.slane %v843_v36, 2  ;;  %v862_v55 = vrot.slane %v844_v38, 1 }
 0x4c3   :  { %v865_v59 = vrot.slane %v846_v40, 7  ;;  %v867_v61 = vrot.slane %v847_v44, 6  ;;  %v869_v63 = vrot.slane %v848_v45, 5 }
 0x4c4   :  { %v859_v46 = vsel %vm351_vm5, %v858_v42, %v857_v41 }
 0x4c5   :  { %v861_v57 = vsel %vm354_vm6, %v860_v43, %v859_v46 }
 0x4c6   :  { %v863_v58 = vsel %vm357_vm7, %v862_v55, %v861_v57 }
 0x4c7   :  { %v864_v60 = vsel %vm360_vm8, %v845_v56, %v863_v58 }
 0x4c8   :  { %v866_v62 = vsel %vm363_vm9, %v865_v59, %v864_v60 }
 0x4c9   :  { %v868_v0 = vsel %vm366_vm10, %v867_v61, %v866_v62 }
 0x4ca   :  { %v870_v3 = vsel %vm369_vm11, %v869_v63, %v868_v0 }
 0x4cb   :  { %1716 = vmatmul.mubr.f32.vlgmr.msra.gmra.mrb[12].mxu0 %v870_v3 }
 0x4cc   :  { %1964 = vmatpush3.bf16.msra.mxu0 %v2197_v6  ;;  %1785 = vmatprep.mubr.msk.f32.mxu0 %vm2099_vm0, %v2100_v2 }
 0x4cd   :  { %1965 = vmatprep.subr.bf16.mxu0 %v2098_v1 }
 0x4d0   :  { %1967 = vmatpush3.bf16.msra.mxu0 %v2200_v9 }
 0x4d1   :  { %1968 = vmatprep.subr.bf16.mxu0 %v2098_v1 }
 0x4d4   :  { %1970 = vmatpush3.bf16.msra.mxu0 %v2205_v15 }
 0x4d5   :  { %1971 = vmatprep.subr.bf16.mxu0 %v2098_v1 }
 0x4d8   :  { %1973 = vmatpush3.bf16.msra.mxu0 %v2211_v20 }
 0x4d9   :  { %1974 = vmatprep.subr.bf16.mxu0 %v2098_v1 }
 0x4dc   :  { %1976 = vmatpush3.bf16.msra.mxu0 %v2219_v25 }
 0x4dd   :  { %1977 = vmatprep.subr.bf16.mxu0 %v2098_v1 }
 0x4e0   :  { %1979 = vmatpush3.bf16.msra.mxu0 %v2227_v30 }
 0x4e1   :  { %1980 = vmatprep.subr.bf16.mxu0 %v2098_v1 }
 0x4e4   :  { %1982 = vmatpush3.bf16.msra.mxu0 %v2235_v34 }
 0x4e5   :  { %1983 = vmatprep.subr.bf16.mxu0 %v2098_v1 }
 0x4e8   :  { %1985 = vmatpush3.bf16.msra.mxu0 %v2243_v37 }
 0x59e   :  { %v938_v2 = vpop.f32.mrb[12].mxu0 }
 0x59f   :  { %v943_v6 = vrot.slane %v938_v2, 3  ;;  %v944_v9 = vrot.slane %v938_v2, 4  ;;  %v945_v15 = vrot.slane %v938_v2, 5  ;;  %v946_v20 = vrot.slane %v938_v2, 6  ;;  %v1717_v4 = vpop.f32.mrb[13].mxu0 }
 0x5a0   :  { %v947_v5 = vrot.slane %v938_v2, 7  ;;  %v948_v25 = vrot.slane %v938_v2, 1  ;;  %v949_v7 = vrot.slane %v938_v2, 2  ;;  %v963_v18 = vadd.f32 %v938_v2, %v2288_v52 }
 0x5a1   :  { %v958_v8 = vadd.f32 %v943_v6, %v2280_v48  ;;  %v959_v30 = vadd.f32 %v944_v9, %v2278_v47  ;;  %v960_v10 = vadd.f32 %v945_v15, %v2286_v51  ;;  %v961_v34 = vadd.f32 %v946_v20, %v2282_v49 }
 0x5a2   :  { %v962_v1 = vadd.f32 %v947_v5, %v2284_v50  ;;  %v964_v37 = vadd.f32 %v948_v25, %v2292_v54  ;;  %v965_v11 = vadd.f32 %v949_v7, %v2290_v53  ;;  %v971_v31 = vmax.f32 %v963_v18, 0.0 }
 0x5a3   :  { %v966_v12 = vmax.f32 %v958_v8, 0.0  ;;  %v967_v13 = vmax.f32 %v959_v30, 0.0  ;;  %v968_v14 = vmax.f32 %v960_v10, 0.0  ;;  %v969_v16 = vmax.f32 %v961_v34, 0.0 }
 0x5a4   :  { %v970_v17 = vmax.f32 %v962_v1, 0.0  ;;  %v972_v23 = vmax.f32 %v964_v37, 0.0  ;;  %v973_v24 = vmax.f32 %v965_v11, 0.0 }
 0x5a5   :  { %v982_v19 = vrot.slane %v966_v12, 5  ;;  %v983_v21 = vrot.slane %v967_v13, 4  ;;  %v985_v22 = vrot.slane %v968_v14, 3  ;;  %v987_v27 = vrot.slane %v969_v16, 2 }
 0x5a6   :  { %v989_v29 = vrot.slane %v970_v17, 1  ;;  %v992_v35 = vrot.slane %v972_v23, 7  ;;  %v994_v38 = vrot.slane %v973_v24, 6 }
 0x5a7   :  { %v984_v26 = vsel %vm351_vm5, %v983_v21, %v982_v19 }
 0x5a8   :  { %v986_v28 = vsel %vm354_vm6, %v985_v22, %v984_v26 }
 0x5a9   :  { %v988_v32 = vsel %vm357_vm7, %v987_v27, %v986_v28 }
 0x5aa   :  { %v990_v33 = vsel %vm360_vm8, %v989_v29, %v988_v32 }
 0x5ab   :  { %v991_v36 = vsel %vm363_vm9, %v971_v31, %v990_v33 }
 0x5ac   :  { %v993_v39 = vsel %vm366_vm10, %v992_v35, %v991_v36 }
 0x5ad   :  { %v995_v40 = vsel %vm369_vm11, %v994_v38, %v993_v39 }
 0x5ae   :  { %1751 = vmatmul.mubr.f32.vlgmr.msra.gmra.mrb[6].mxu1 %v995_v40 }
 0x681   :  { %v1063_v41 = vpop.f32.mrb[6].mxu1 }
 0x682   :  { %v1068_v42 = vrot.slane %v1063_v41, 2  ;;  %v1069_v43 = vrot.slane %v1063_v41, 3  ;;  %v1070_v44 = vrot.slane %v1063_v41, 4  ;;  %v1071_v45 = vrot.slane %v1063_v41, 5  ;;  %v1752_v46 = vpop.f32.mrb[7].mxu1 }
 0x683   :  { %v1072_v55 = vrot.slane %v1063_v41, 6  ;;  %v1073_v56 = vrot.slane %v1063_v41, 7  ;;  %v1074_v57 = vrot.slane %v1063_v41, 1  ;;  %v1089_v7 = vadd.f32 %v1063_v41, %v2292_v54 }
 0x684   :  { %v1083_v58 = vadd.f32 %v1068_v42, %v2280_v48  ;;  %v1084_v59 = vadd.f32 %v1069_v43, %v2278_v47  ;;  %v1085_v60 = vadd.f32 %v1070_v44, %v2286_v51  ;;  %v1086_v61 = vadd.f32 %v1071_v45, %v2282_v49 }
 0x685   :  { %v1087_v62 = vadd.f32 %v1072_v55, %v2284_v50  ;;  %v1088_v63 = vadd.f32 %v1073_v56, %v2288_v52  ;;  %v1090_v0 = vadd.f32 %v1074_v57, %v2290_v53  ;;  %v1097_v12 = vmax.f32 %v1089_v7, 0.0  ;;  %v1345_v7 = vld [vmem:[#allocation3] ss:$0 sm:$0xff] }
 0x686   :  { %v1091_v3 = vmax.f32 %v1083_v58, 0.0  ;;  %v1092_v2 = vmax.f32 %v1084_v59, 0.0  ;;  %v1093_v6 = vmax.f32 %v1085_v60, 0.0  ;;  %v1094_v9 = vmax.f32 %v1086_v61, 0.0 }
 0x687   :  { %v1095_v15 = vmax.f32 %v1087_v62, 0.0  ;;  %v1096_v20 = vmax.f32 %v1088_v63, 0.0  ;;  %v1098_v8 = vmax.f32 %v1090_v0, 0.0 }
 0x688   :  { %v1107_v4 = vrot.slane %v1091_v3, 6  ;;  %v1108_v5 = vrot.slane %v1092_v2, 5  ;;  %v1110_v25 = vrot.slane %v1093_v6, 4  ;;  %v1112_v10 = vrot.slane %v1094_v9, 3 }
 0x689   :  { %v1114_v1 = vrot.slane %v1095_v15, 2  ;;  %v1116_v11 = vrot.slane %v1096_v20, 1  ;;  %v1119_v16 = vrot.slane %v1098_v8, 7 }
 0x68a   :  { %v1109_v30 = vsel %vm351_vm5, %v1108_v5, %v1107_v4 }
 0x68b   :  { %v1111_v34 = vsel %vm354_vm6, %v1110_v25, %v1109_v30  ;;  %v2102_v25 = vmov 0  }
 0x68c   :  { %v1113_v37 = vsel %vm357_vm7, %v1112_v10, %v1111_v34  ;;  %1997 = vset.pattern.permute.xlu1 %v2102_v25  ;;  %1998 = vset.pattern.permute.xlu0 %v2102_v25 }
 0x68d   :  { %v1115_v13 = vsel %vm360_vm8, %v1114_v1, %v1113_v37 }
 0x68e   :  { %v1117_v14 = vsel %vm363_vm9, %v1116_v11, %v1115_v13 }
 0x68f   :  { %v1118_v17 = vsel %vm366_vm10, %v1097_v12, %v1117_v14 }
 0x690   :  { %v1120_v18 = vsel %vm369_vm11, %v1119_v16, %v1118_v17 }
 0x691   :  { %1786 = vmatmul.mubr.f32.vlgmr.msra.gmra.mrb[14].mxu0 %v1120_v18 }
 0x764   :  { %v1188_v19 = vpop.f32.mrb[14].mxu0 }
 0x765   :  { %v1194_v21 = vrot.slane %v1188_v19, 2  ;;  %v1195_v22 = vrot.slane %v1188_v19, 3  ;;  %v1196_v23 = vrot.slane %v1188_v19, 4  ;;  %v1787_v24 = vpop.f32.mrb[15].mxu0  ;;  %v1193_v26 = vrot.slane %v1188_v19, 1 }
 0x766   :  { %v1197_v27 = vrot.slane %v1188_v19, 5  ;;  %v1198_v28 = vrot.slane %v1188_v19, 6  ;;  %v1199_v29 = vrot.slane %v1188_v19, 7  ;;  %v1215_v40 = vadd.f32 %v1188_v19, %v2290_v53 }
 0x767   :  { %v1208_v31 = vadd.f32 %v1193_v26, %v2280_v48  ;;  %v1209_v32 = vadd.f32 %v1194_v21, %v2278_v47  ;;  %v1210_v33 = vadd.f32 %v1195_v22, %v2286_v51  ;;  %v1211_v35 = vadd.f32 %v1196_v23, %v2282_v49  ;;  %v1344_v47 = vld [vmem:[%s2521_s4] ss:$0 sm:$0xff]  ;;  %s2103_s4 = smov [#allocation10]  }
 0x768   :  { %v1212_v36 = vadd.f32 %v1197_v27, %v2284_v50  ;;  %v1213_v38 = vadd.f32 %v1198_v28, %v2288_v52  ;;  %v1214_v39 = vadd.f32 %v1199_v29, %v2292_v54  ;;  %v1223_v46 = vmax.f32 %v1215_v40, 0.0  ;;  %s1324_s11 = sshll.u32 %s2103_s4, 4  ;;  %s1325_s11 = int_to_ptr.vmem [resolvable:$true] %s1324_s11 }
 0x769   :  { %v1216_v41 = vmax.f32 %v1208_v31, 0.0  ;;  %v1217_v42 = vmax.f32 %v1209_v32, 0.0  ;;  %v1218_v43 = vmax.f32 %v1210_v33, 0.0  ;;  %v1219_v44 = vmax.f32 %v1211_v35, 0.0  ;;  %s2065_s12 = scalar_lea.vmem %s1325_s11, 128  ;;  %p2070_p11 = scmp.lt.s32.totalorder %s1325_s11, %s1325_s11 }
 0x76a   :  { %v1220_v48 = vmax.f32 %v1212_v36, 0.0  ;;  %v1221_v51 = vmax.f32 %v1213_v38, 0.0  ;;  %v1222_v45 = vmax.f32 %v1214_v39, 0.0  ;;  %v1266_v60 = vmul.f32 %v1344_v47, %v1223_v46  ;;  %p2066_p10 = scmp.ne.s32.totalorder %s1325_s11, %s2065_s12  ;;  %p2071_p12 = scmp.lt.s32.totalorder %s2065_s12, %s2065_s12 }
 0x76b   :  { %v1259_v49 = vmul.f32 %v1344_v47, %v1216_v41  ;;  %v1260_v50 = vmul.f32 %v1344_v47, %v1217_v42  ;;  %v1261_v55 = vmul.f32 %v1344_v47, %v1218_v43  ;;  %v1262_v54 = vmul.f32 %v1344_v47, %v1219_v44 }
 0x76c   :  { %v1263_v53 = vmul.f32 %v1344_v47, %v1220_v48  ;;  %v1264_v56 = vmul.f32 %v1344_v47, %v1221_v51  ;;  %v1265_v57 = vmul.f32 %v1344_v47, %v1222_v45  ;;  %v1286_v15 = vrot.slane %v1266_v60, 1  ;;  %p2072_p13 = por %p2071_p12, %p2070_p11 }
 0x76d   :  { %v1290_v52 = vsel %vm369_vm11, %v1259_v49, 0.0  ;;  %v1275_v58 = vrot.slane %v1260_v50, 7  ;;  %v1276_v59 = vrot.slane %v1261_v55, 6  ;;  %v1278_v61 = vrot.slane %v1262_v54, 5 }
 0x76e   :  { %1291 = vadd.xlane.f32.xlu0 %v1290_v52  ;;  %v1280_v63 = vrot.slane %v1263_v53, 4  ;;  %v1282_v3 = vrot.slane %v1264_v56, 3  ;;  %v1284_v6 = vrot.slane %v1265_v57, 2  ;;  %p2073_p0 = pnand %p2072_p13, %p2066_p10 }
 0x76f   :  { %v1277_v62 = vsel %vm351_vm5, %v1276_v59, %v1275_v58 }
 0x770   :  { %v1279_v0 = vsel %vm354_vm6, %v1278_v61, %v1277_v62 }
 0x771   :  { %v1281_v2 = vsel %vm357_vm7, %v1280_v63, %v1279_v0 }
 0x772   :  { %v1283_v9 = vsel %vm360_vm8, %v1282_v3, %v1281_v2 }
 0x773   :  { %v1285_v20 = vsel %vm363_vm9, %v1284_v6, %v1283_v9 }
 0x774   :  { %v1287_v4 = vsel %vm366_vm10, %v1286_v15, %v1285_v20 }
 0x775   :  { %v1294_v5 = vsel %vm1293_vm12, %v1287_v4, 0.0 }
 0x776   :  { %1295 = vadd.xlane.f32.xlu0 %v1294_v5 }
 0x7fb   :  { %v1292_v8 = vpop.xlane.xlu0 %1291 }
 0x7fc   :  { %v1304_v30 = vadd.f32 %v1345_v7, %v1292_v8 }
 0x7fe   :  { %1308 = vperm.xlu1 %1997, %v1304_v30  }
 0x803   :  { %v1296_v10 = vpop.xlane.xlu0 %1295 }
 0x804   :  { %v1305_v34 = vadd.f32 %v1345_v7, %v1296_v10 }
 0x806   :  { %1313 = vperm.xlu1 %1997, %v1305_v34  }
 0x87d   :  { %v1309_v1 = vpop.permute.xlu1 %1308 }
 0x87e   :  { %1316 = vst [vmem:[#allocation10 - $0x7] sm:$0x80] %v1309_v1 }
 0x885   :  { %v1314_v37 = vpop.permute.xlu1 %1313 }
 0x886   :  { %1317 = vst [vmem:[#allocation10 + $0x1] sm:$0x7f] %v1314_v37 }
 0x887   :  { %2076 = shalt.err (!%p2073_p0)
}
 0x888   :  { %s2077_s15 = scalar_lea.hbm %s2523_s6, 128 }
 0x889   :  { %p2078_p1 = scmp.ne.s32.totalorder %s2523_s6, %s2077_s15  ;;  %p2081_p2 = scmp.lt.u32.totalorder %s2077_s15, %s2523_s6 }
 0x88b   :  { %p2083_p3 = pnand %p2081_p2, %p2078_p1 }
 0x88d   :  { %2086 = shalt.err (!%p2083_p3)
}
 0x88e   :  { %1327 = dma.vmem_to_hbm [thread:$0]  %s1325_s11, 128, %s2523_s6, [#allocation6]  }
 0x88f   :  { %2091 = dma.done.wait [#allocation6], 128  }
 0x890   :  { %2092 = vsyncadd [#allocation6], 4294967168 }
 0x891   :  { %1331 = vsyncpa [#allocation5], 1 }
 0x892   :  { %1332 = vsyncpa [#allocation8], 1 }
 0x893   :  { %1333 = vsyncpa [#allocation6], 1 }

</bundles_post_ra>
